<compile_context>
chip_gen: v6e
topology: v6e:2x2x1
jax: 0.10.0
libtpu: 0.0.40
codegen_flags: <defaults>
</compile_context>

<pallas_src>
import jax
import jax.numpy as jnp
from jax.experimental import pallas as pl
from jax.experimental.pallas import tpu as pltpu


def _threshold1d_kernel(x_ref, t_ref, o_ref):
    # x_ref: (TM, TL) tile; t_ref: (TM, 1) per-row thresholds, broadcast over lanes.
    res = jnp.maximum(x_ref[...] - t_ref[...], 0.0)            # ReLU(x - t)
    # res >= 0 after the ReLU, so res / (res + 1e-8) == res / (|res| + 1e-8).
    o_ref[...] = res / (res + jnp.float32(1e-8))


def _round_down_mult(n, m):
    return (n // m) * m


def threshold1d(x: jax.Array, thresholds: jax.Array) -> jax.Array:
    """x: (B, C, L), thresholds: (1, C, 1) -> relu(x - t) / (|relu(x - t)| + 1e-8)."""
    B, C, L = x.shape
    assert thresholds.shape == (1, C, 1)
    R = B * C
    itemsize = jnp.dtype(x.dtype).itemsize

    # Lane-dense 2-D layout: rows = (batch, channel), lanes = length.
    x2 = x.reshape(R, L)
    # Per-row threshold (only B*C scalars); broadcast over L happens in-kernel.
    t2 = jnp.broadcast_to(thresholds.reshape(1, C), (B, C)).reshape(R, 1)

    # ---- Tile selection (pure HBM streaming: big lane-dense tiles, ragged edges OK) ----
    # Lane tile: full extent for small L (legal for any L); otherwise a fixed
    # 1024-lane tile (multiple of 128) with a masked ragged last block.
    TL = L if L <= 1024 else 1024

    # Row tile: multiple of 8, capped so a single tile is <= ~4 MiB.  With
    # double-buffered in+out this is ~16 MiB, under the 32 MiB limit everywhere.
    tile_budget = 4 * 1024 * 1024
    rows_cap = max(8, _round_down_mult(tile_budget // (TL * itemsize), 8))
    TM = R if R <= rows_cap else rows_cap

    grid_r = pl.cdiv(R, TM)
    grid_l = pl.cdiv(L, TL)

    # v7x megacore: if a sizeable array would land in a single tile, split the rows
    # so both TensorCores get work under ("parallel", "parallel").
    total_bytes = R * L * itemsize
    if grid_r * grid_l == 1 and total_bytes >= (2 << 20) and R >= 16:
        TM = max(8, _round_down_mult(R // 2, 8))
        grid_r = pl.cdiv(R, TM)

    # Grid order is rows-outer / lanes-inner on purpose: the threshold block index
    # (i, 0) is constant across the inner lane loop, so it is not re-DMA'd per step.
    grid = (grid_r, grid_l)

    out2 = pl.pallas_call(
        _threshold1d_kernel,
        out_shape=jax.ShapeDtypeStruct((R, L), x.dtype),
        grid_spec=pltpu.PrefetchScalarGridSpec(
            num_scalar_prefetch=0,
            grid=grid,
            in_specs=[
                pl.BlockSpec((TM, TL), lambda i, j: (i, j)),
                pl.BlockSpec((TM, 1), lambda i, j: (i, 0)),
            ],
            out_specs=pl.BlockSpec((TM, TL), lambda i, j: (i, j)),
        ),
        compiler_params=pltpu.CompilerParams(
            # Disjoint output tiles per grid step -> both axes shardable across TCs.
            dimension_semantics=("parallel", "parallel"),
            vmem_limit_bytes=32 * 1024 * 1024,
        ),
        cost_estimate=pl.CostEstimate(
            flops=3 * R * L,
            transcendentals=0,
            bytes_accessed=2 * R * L * itemsize + R * itemsize,
        ),
    )(x2, t2)

    return out2.reshape(B, C, L)


def _reference(x, thresholds):
    res = jnp.maximum(x - thresholds, 0.0)
    return res / (jnp.abs(res) + 1e-8)


if __name__ == "__main__":
    key = jax.random.PRNGKey(0)
    k1, k2, k3 = jax.random.split(key, 3)

    # Case 1: small shapes consistent with the module (batch=2, channels=4, length=16).
    B, C, L = 2, 4, 16
    x = jax.random.normal(k1, (B, C, L), dtype=jnp.float32)
    thr = jnp.linspace(-0.5, 0.5, C, dtype=jnp.float32).reshape(1, C, 1)
    out = threshold1d(x, thr)
    jax.block_until_ready(out)
    assert out.shape == (B, C, L)
    assert jnp.allclose(out, _reference(x, thr), atol=1e-6), "mismatch (small case)"

    # Case 2: awkward non-128-aligned L > 1024 -> tiled lanes with a ragged last block.
    B2, C2, L2 = 2, 8, 1408
    x_b = jax.random.normal(k2, (B2, C2, L2), dtype=jnp.float32)
    thr_b = jnp.linspace(-1.0, 1.0, C2, dtype=jnp.float32).reshape(1, C2, 1)
    out_b = threshold1d(x_b, thr_b)
    jax.block_until_ready(out_b)
    assert jnp.allclose(out_b, _reference(x_b, thr_b), atol=1e-6), "mismatch (ragged case)"

    # Case 3: medium array that would otherwise fit a single tile -> exercises the
    # 2-tile row split for the two v7x TensorCores.
    B3, C3, L3 = 32, 32, 768
    x_m = jax.random.normal(k3, (B3, C3, L3), dtype=jnp.float32)
    thr_m = jnp.linspace(-1.0, 1.0, C3, dtype=jnp.float32).reshape(1, C3, 1)
    out_m = threshold1d(x_m, thr_m)
    jax.block_until_ready(out_m)
    assert jnp.allclose(out_m, _reference(x_m, thr_m), atol=1e-6), "mismatch (split case)"

    print("KERNEL_OK")
</pallas_src>

<mosaic_0001>
module attributes {stable_mosaic.version = 11 : i64} {
  func.func @_threshold1d_kernel(%arg0: i32, %arg1: i32, %arg2: memref<8x16xf32, #tpu.memory_space<vmem>>, %arg3: memref<8x1xf32, #tpu.memory_space<vmem>>, %arg4: memref<8x16xf32, #tpu.memory_space<vmem>>) attributes {dimension_semantics = [#tpu.dimension_semantics<parallel>, #tpu.dimension_semantics<parallel>], iteration_bounds = array<i64: 1, 1>, scalar_prefetch = 0 : i64, scratch_operands = 0 : i64, tpu.core_type = #tpu.core_type<tc>, window_params = [{transform_indices = @transform_0, window_bounds = array<i64: 8, 16>}, {transform_indices = @transform_1, window_bounds = array<i64: 8, 1>}, {transform_indices = @transform_2, window_bounds = array<i64: 8, 16>}]} {
    %c0 = arith.constant 0 : index
    %c0_0 = arith.constant 0 : index
    %0 = vector.load %arg2[%c0, %c0_0] : memref<8x16xf32, #tpu.memory_space<vmem>>, vector<8x16xf32>
    %c0_1 = arith.constant 0 : index
    %c0_2 = arith.constant 0 : index
    %1 = vector.load %arg3[%c0_1, %c0_2] : memref<8x1xf32, #tpu.memory_space<vmem>>, vector<8x1xf32>
    %2 = vector.broadcast %1 : vector<8x1xf32> to vector<8x16xf32>
    %3 = arith.subf %0, %2 : vector<8x16xf32>
    %cst = arith.constant 0.000000e+00 : f32
    %4 = vector.broadcast %cst : f32 to vector<8x16xf32>
    %5 = arith.maximumf %3, %4 : vector<8x16xf32>
    %cst_3 = arith.constant 9.99999993E-9 : f32
    %6 = vector.broadcast %cst_3 : f32 to vector<8x16xf32>
    %7 = arith.addf %5, %6 : vector<8x16xf32>
    %8 = arith.divf %5, %7 : vector<8x16xf32>
    %c0_4 = arith.constant 0 : index
    %c0_5 = arith.constant 0 : index
    %9 = vector.load %arg4[%c0_4, %c0_5] : memref<8x16xf32, #tpu.memory_space<vmem>>, vector<8x16xf32>
    tpu.vector_store %arg4[%c0_4, %c0_5], %8 {strides = array<i32>} : memref<8x16xf32, #tpu.memory_space<vmem>>, vector<8x16xf32>,
    return
  }
  func.func @transform_0(%arg0: i32, %arg1: i32) -> (i32, i32) {
    %c0_i32 = arith.constant 0 : i32
    return %arg0, %arg1 : i32, i32
  }
  func.func @transform_1(%arg0: i32, %arg1: i32) -> (i32, i32) {
    %c0_i32 = arith.constant 0 : i32
    %c0_i32_0 = arith.constant 0 : i32
    return %arg0, %c0_i32 : i32, i32
  }
  func.func @transform_2(%arg0: i32, %arg1: i32) -> (i32, i32) {
    %c0_i32 = arith.constant 0 : i32
    return %arg0, %arg1 : i32, i32
  }
}

</mosaic_0001>

<bundles_post_ra>
// kernel: tpu_custom_call.1
= control target key start
LH: loop header
LB: loop body
LE: loop exit
PB: predicated region body
PF: predicated region fallthrough
CT: control target
= control target key end

     0   :  { %s93_s0 = inlined_call_operand.vmem [shape: f32[8,16], index: 0, kind: input, shape index: {}]   ;;  %s94_s1 = inlined_call_operand.vmem [shape: f32[8,1], index: 1, kind: input, shape index: {}]   ;;  %s95_s2 = inlined_call_operand.hbm [shape: f32[8,16], index: 2, kind: output, shape index: {}]  }
   0x1   :  { %v13_v0 = vld [vmem:[%s94_s1] sm:$0xff] }
   0x2   :  { %7 = vsyncpa [#allocation3], 0  ;;  %v67_v1 = vmov 0   ;;  %v12_v2 = vld [vmem:[%s93_s0] sm:$0xff]  ;;  %s68_s13 = smov [#allocation2]   ;;  %vm24_vm0 = vcmask 130048  }
   0x3   :  { %42 = vset.pattern.permute.xlu0 %v67_v1  ;;  %s32_s14 = sshll.u32 %s68_s13, 4  ;;  %s33_s14 = int_to_ptr.vmem [resolvable:$true] %s32_s14 }
   0x4   :  { %16 = vperm.xlu0 %42, %v13_v0   ;;  %s45_s1 = scalar_lea.vmem %s33_s14, 128  ;;  %p50_p1 = scmp.lt.s32.totalorder %s33_s14, %s33_s14 }
   0x5   :  { %p46_p0 = scmp.ne.s32.totalorder %s33_s14, %s45_s1  ;;  %p51_p2 = scmp.lt.s32.totalorder %s45_s1, %s45_s1 }
   0x7   :  { %p52_p3 = por %p51_p2, %p50_p1 }
   0x9   :  { %p53_p4 = pnand %p52_p3, %p46_p0 }
  0x7f   :  { %v17_v3 = vpop.permute.xlu0 %16 }
  0x80   :  { %v19_v4 = vsub.f32 %v12_v2, %v17_v3 }
  0x82   :  { %v20_v5 = vmax.f32 %v19_v4, 0.0 }
  0x84   :  { %v21_v6 = vadd.f32 1e-08, %v20_v5 }
  0x86   :  { %43 = vrcp.f32 %v21_v6 }
  0x93   :  { %v44_v7 = vpop.eup %43 }
  0x94   :  { %v23_v8 = vmul.f32 %v44_v7, %v20_v5 }
  0x96   :  { %25 = vst.msk [vmem:[#allocation2] sm:$0xff] %vm24_vm0, %v23_v8 }
  0x97   :  { %56 = shalt.err (!%p53_p4)
}
  0x98   :  { %35 = dma.vmem_to_hbm [thread:$0]  %s33_s14, 128, %s95_s2, [#allocation3]  }
  0x99   :  { %65 = dma.done.wait [#allocation3], 128  }
  0x9a   :  { %66 = vsyncadd [#allocation3], 4294967168 }
  0x9b   :  { %39 = vsyncpa [#allocation3], 1 }

</bundles_post_ra>
